<compile_context>
chip_gen: v7x
topology: tpu7x:2x2x1
jax: 0.10.0
libtpu: 0.0.40
codegen_flags: <defaults>
</compile_context>

<pallas_src>
import jax
import jax.numpy as jnp
from jax.experimental import pallas as pl
from jax.experimental.pallas import tpu as pltpu

_LANE = 128                      # vreg lane width (last-dim tile)
_TARGET_BLOCK_BYTES = 4 << 20    # ~4 MiB blocks -> 16 MiB pipelined VMEM (v7x-safe)
_PALLAS_MIN_ELEMS = 256 * 1024   # below ~1 MiB of f32, a kernel launch is overhead


def _round_up(v, m):
    return ((v + m - 1) // m) * m


def _sublane_multiple(dtype):
    # (8,128) minimum tile is f32-specific; sub-32-bit dtypes pack along sublanes
    # (bf16 -> 16 rows, int8/fp8 -> 32 rows).
    return max(8, 32 // jnp.dtype(dtype).itemsize)


def linreg_kernel(w_ref, b_ref, x_ref, o_ref):
    # Scalars from SMEM; one fused VPU multiply-add per vreg, full-width stores.
    o_ref[...] = w_ref[0] * x_ref[...] + b_ref[0]


def _linear_regression_pallas(x, weight, bias):
    """y = weight * x + bias via a tiled, HBM-roofline Pallas kernel."""
    orig_shape = x.shape
    dtype = x.dtype
    itemsize = jnp.dtype(dtype).itemsize
    sub = _sublane_multiple(dtype)

    x_flat = x.reshape(-1)                    # free (contiguous)
    n = x_flat.shape[0]

    # Lane-dense (rows, 128) view.  128-aligned n -> free reshape, no padding,
    # no output slice.  Ragged n (rare for real ML shapes) pads the tail only.
    rem = n % _LANE
    n_padded = n if rem == 0 else _round_up(n, sub * _LANE)
    if n_padded != n:
        x_flat = jnp.pad(x_flat, (0, n_padded - n))
    rows = n_padded // _LANE
    x2d = x_flat.reshape(rows, _LANE)

    # Row-tile size: target ~4 MiB blocks, dtype-aware sublane multiple, and
    # keep the grid >= 2 roughly equal steps when possible (v7x megacore).
    target_rows = max(sub, (_TARGET_BLOCK_BYTES // (_LANE * itemsize)) // sub * sub)
    if rows <= sub:
        tm = rows                             # single full-extent block
    elif rows < 2 * target_rows:
        tm = min(target_rows, _round_up(pl.cdiv(rows, 2), sub))
    else:
        tm = target_rows
    grid = (pl.cdiv(rows, tm),)               # last block may be partial; Pallas masks it

    out2d = pl.pallas_call(
        linreg_kernel,
        out_shape=jax.ShapeDtypeStruct((rows, _LANE), dtype),
        grid=grid,
        in_specs=[
            pl.BlockSpec(memory_space=pltpu.SMEM),    # weight (1,)
            pl.BlockSpec(memory_space=pltpu.SMEM),    # bias (1,)
            pl.BlockSpec((tm, _LANE), lambda i: (i, 0), memory_space=pltpu.VMEM),
        ],
        out_specs=pl.BlockSpec((tm, _LANE), lambda i: (i, 0),
                               memory_space=pltpu.VMEM),
        compiler_params=pltpu.CompilerParams(
            dimension_semantics=("parallel",),
        ),
        cost_estimate=pl.CostEstimate(
            flops=2 * n,
            transcendentals=0,
            bytes_accessed=2 * n * itemsize,
        ),
    )(weight, bias, x2d)

    out = out2d.reshape(-1)
    if n_padded != n:
        out = out[:n]
    return out.reshape(orig_shape)


linear_regression_pallas = jax.jit(_linear_regression_pallas)


@jax.jit
def linear_regression(x, weight, bias):
    """Forward pass of the PyTorch LinearRegression module."""
    if x.size < _PALLAS_MIN_ELEMS:
        # Launch-overhead dominated; XLA's fused elementwise is the honest fast path.
        return weight * x + bias
    return _linear_regression_pallas(x, weight, bias)


if __name__ == "__main__":
    # Module input: torch.arange(0, 1, 0.02).unsqueeze(1) -> (50, 1) float32.
    x = jnp.arange(0.0, 1.0, 0.02, dtype=jnp.float32).reshape(-1, 1)

    # Deterministic parameter init (mirrors torch.randn(1) for weight/bias).
    key = jax.random.PRNGKey(0)
    kw, kb = jax.random.split(key)
    weight = jax.random.normal(kw, (1,), dtype=jnp.float32)
    bias = jax.random.normal(kb, (1,), dtype=jnp.float32)

    # 1) Force the Pallas kernel on the module's actual (tiny, ragged) input.
    out_small = jax.block_until_ready(linear_regression_pallas(x, weight, bias))
    ref_small = weight * x + bias
    assert out_small.shape == x.shape
    assert jnp.allclose(out_small, ref_small, atol=1e-6), "small-input mismatch"

    # 2) 128-aligned input: exercises the zero-copy reshape + 2-step grid path.
    x_big = jax.random.normal(kb, (256, 128), dtype=jnp.float32)
    out_big = jax.block_until_ready(linear_regression_pallas(x_big, weight, bias))
    ref_big = weight * x_big + bias
    assert out_big.shape == x_big.shape
    assert jnp.allclose(out_big, ref_big, atol=1e-6), "aligned-input mismatch"

    # 3) Size-dispatching wrapper (small input routes to plain XLA).
    out_disp = jax.block_until_ready(linear_regression(x, weight, bias))
    assert jnp.allclose(out_disp, ref_small, atol=1e-6), "dispatcher mismatch"

    print("KERNEL_OK")
</pallas_src>

<mosaic_0001>
module attributes {stable_mosaic.version = 11 : i64} {
  func.func @linreg_kernel(%arg0: i32, %arg1: memref<1xf32, #tpu.memory_space<smem>>, %arg2: memref<1xf32, #tpu.memory_space<smem>>, %arg3: memref<8x128xf32, #tpu.memory_space<vmem>>, %arg4: memref<8x128xf32, #tpu.memory_space<vmem>>) attributes {dimension_semantics = [#tpu.dimension_semantics<parallel>], iteration_bounds = array<i64: 1>, scalar_prefetch = 0 : i64, scratch_operands = 0 : i64, tpu.core_type = #tpu.core_type<tc>, window_params = [{transform_indices = @transform_0, window_bounds = array<i64: 1>}, {transform_indices = @transform_1, window_bounds = array<i64: 1>}, {transform_indices = @transform_2, window_bounds = array<i64: 8, 128>}, {transform_indices = @transform_3, window_bounds = array<i64: 8, 128>}]} {
    %c0 = arith.constant 0 : index
    %0 = memref.load %arg1[%c0] : memref<1xf32, #tpu.memory_space<smem>>
    %c0_0 = arith.constant 0 : index
    %c0_1 = arith.constant 0 : index
    %1 = vector.load %arg3[%c0_0, %c0_1] : memref<8x128xf32, #tpu.memory_space<vmem>>, vector<8x128xf32>
    %2 = vector.broadcast %0 : f32 to vector<8x128xf32>
    %3 = arith.mulf %2, %1 : vector<8x128xf32>
    %c0_2 = arith.constant 0 : index
    %4 = memref.load %arg2[%c0_2] : memref<1xf32, #tpu.memory_space<smem>>
    %5 = vector.broadcast %4 : f32 to vector<8x128xf32>
    %6 = arith.addf %3, %5 : vector<8x128xf32>
    %c0_3 = arith.constant 0 : index
    %c0_4 = arith.constant 0 : index
    %7 = vector.load %arg4[%c0_3, %c0_4] : memref<8x128xf32, #tpu.memory_space<vmem>>, vector<8x128xf32>
    tpu.vector_store %arg4[%c0_3, %c0_4], %6 {strides = array<i32>} : memref<8x128xf32, #tpu.memory_space<vmem>>, vector<8x128xf32>,
    return
  }
  func.func @transform_0(%arg0: i32) -> i32 {
    %c0_i32 = arith.constant 0 : i32
    %c0_i32_0 = arith.constant 0 : i32
    return %c0_i32 : i32
  }
  func.func @transform_1(%arg0: i32) -> i32 {
    %c0_i32 = arith.constant 0 : i32
    %c0_i32_0 = arith.constant 0 : i32
    return %c0_i32 : i32
  }
  func.func @transform_2(%arg0: i32) -> (i32, i32) {
    %c0_i32 = arith.constant 0 : i32
    %c0_i32_0 = arith.constant 0 : i32
    return %arg0, %c0_i32 : i32, i32
  }
  func.func @transform_3(%arg0: i32) -> (i32, i32) {
    %c0_i32 = arith.constant 0 : i32
    %c0_i32_0 = arith.constant 0 : i32
    return %arg0, %c0_i32 : i32, i32
  }
}

</mosaic_0001>

<bundles_post_ra>
// kernel: _linear_regression_pallas.1
= control target key start
LH: loop header
LB: loop body
LE: loop exit
PB: predicated region body
PF: predicated region fallthrough
CT: control target
= control target key end

     0   :  { %s60_s0 = inlined_call_operand.<no memory space> [shape: f32[1], index: 0, kind: input, shape index: {}]   ;;  %s61_s1 = inlined_call_operand.<no memory space> [shape: f32[1], index: 1, kind: input, shape index: {}]   ;;  %s62_s2 = inlined_call_operand.vmem [shape: f32[8,128], index: 2, kind: input, shape index: {}]   ;;  %s63_s3 = inlined_call_operand.vmem [shape: f32[8,128], index: 3, kind: output, shape index: {}]  }
   0x1   :  { %v17_v0 = vld [vmem:[%s62_s2] sm:$0xff]  ;;  %v18_v1 = vstv %s60_s0  ;;  %v21_v2 = vstv %s61_s1 }
   0x2   :  { %v19_v3 = vmul.f32 %v18_v1, %v17_v0 }
   0x4   :  { %v22_v4 = vadd.f32 %v21_v2, %v19_v3 }
   0x6   :  { %23 = vst [vmem:[%s63_s3] sm:$0xff] %v22_v4 }

</bundles_post_ra>
